<compile_context>
chip_gen: v7x
topology: tpu7x:2x2x1
jax: 0.10.0
libtpu: 0.0.40
codegen_flags: <defaults>
</compile_context>

<pallas_src>
import functools

import jax
import jax.numpy as jnp
from jax.experimental import pallas as pl
from jax.experimental.pallas import tpu as pltpu

N_HIDDEN_LAYERS = 5   # 4 blocks in common_layers + 1 block in fc (before final Linear)
BN_EPS = 1e-5
LANE = 128            # lane width / MXU-native feature padding
MAX_TB = 256          # max batch tile (feeds v6e/v7x 256-wide MXUs; also fine on v5e)


def _round_up(n, m):
    return ((n + m - 1) // m) * m


def _pick_batch_tile(B):
    """Batch tile: no padding of tiny batches to 128, >= 2 grid steps once B > 128."""
    bp16 = _round_up(B, 16)            # bf16 sublane packing
    if bp16 <= LANE:
        return bp16                    # single small tile (grid = 1)
    if bp16 <= 2 * LANE:
        return LANE                    # 2 x 128-row tiles -> both v7x TCs get work
    return MAX_TB                      # large batch: 256-row tiles


def appnet_kernel(x_ref, w_ref, b_ref, wf_ref, bf_ref, o_ref, *, n_split):
    """One batch tile through the whole folded MLP.

    Shapes (per grid step):
      x_ref:  (TB, DP)      bf16  activation tile
      w_ref:  (5, DP, DP)   bf16  folded layer weights (in, out), VMEM-resident
      b_ref:  (5, 1, DP)    f32   folded biases, VMEM-resident
      wf_ref: (1, DP)       bf16  folded final Linear(D,1) weight as a row
      bf_ref: (1,)          f32   folded final bias (SMEM scalar)
      o_ref:  (1, TB)       f32   lane-dense logit row
    """
    tb = x_ref.shape[0]
    half = tb // n_split
    bf = bf_ref[0]

    # n_split independent sub-chains, statically unrolled into one basic block: the
    # LLO scheduler can overlap one chain's MXU matmul with the other chain's
    # f32 bias + ReLU + bf16-cast epilogue.
    for s in range(n_split):
        h = x_ref[s * half:(s + 1) * half, :]                     # bf16 (half, DP)
        for l in range(N_HIDDEN_LAYERS):                          # static unroll
            z = jnp.dot(h, w_ref[l], preferred_element_type=jnp.float32)
            # bias + ReLU in f32 (v5e VPU has no bf16); carry the activation as bf16.
            h = jnp.maximum(z + b_ref[l], 0.0).astype(jnp.bfloat16)
        # Final Linear(D,1) as (1,DP) x (half,DP)^T -> (1, half): logits land directly
        # in lane-dense row layout (contraction over the last dim of both operands).
        row = jax.lax.dot_general(
            wf_ref[...], h,
            dimension_numbers=(((1,), (1,)), ((), ())),
            preferred_element_type=jnp.float32)
        o_ref[:, s * half:(s + 1) * half] = (row + bf).astype(o_ref.dtype)


def appnet_forward(x, params):
    """x: (B, D) float32. Returns (B, 1) float32 (eval-mode forward)."""
    B, D = x.shape
    W, b, gamma, beta, run_mean, run_var, Wf, bf = params

    # ---- one-time JAX glue: fold eval-mode BatchNorm into the *next* layer ----
    scale = gamma / jnp.sqrt(run_var + BN_EPS)            # (5, D)
    shift = beta - run_mean * scale                       # (5, D)
    Ws = [W[0]]
    bs = [b[0]]
    for l in range(1, N_HIDDEN_LAYERS):
        Ws.append(scale[l - 1][:, None] * W[l])           # absorb BN[l-1] scale
        bs.append(b[l] + shift[l - 1] @ W[l])             # absorb BN[l-1] shift
    W_folded = jnp.stack(Ws)                              # (5, D, D)
    b_folded = jnp.stack(bs)                              # (5, D)
    wf_folded = (scale[-1][:, None] * Wf)[:, 0]           # (D,)
    bf_folded = bf + shift[-1] @ Wf                       # (1,)

    # ---- pad to MXU / vreg-native shapes (zero padding is exact) ----
    DP = _round_up(D, LANE)
    tb = _pick_batch_tile(B)
    BP = _round_up(B, tb)
    n_split = 2 if (tb >= 64 and tb % 32 == 0) else 1     # two sub-chains per tile

    x_p = jnp.zeros((BP, DP), jnp.bfloat16).at[:B, :D].set(x.astype(jnp.bfloat16))
    # NOTE: weights are cast to bf16 AFTER folding the BN scale; with pathologically
    # small running_var the folded dynamic range could hurt bf16 precision.
    W_p = (jnp.zeros((N_HIDDEN_LAYERS, DP, DP), jnp.float32)
           .at[:, :D, :D].set(W_folded).astype(jnp.bfloat16))
    b_p = jnp.zeros((N_HIDDEN_LAYERS, 1, DP), jnp.float32).at[:, 0, :D].set(b_folded)
    wf_p = (jnp.zeros((1, DP), jnp.float32).at[0, :D].set(wf_folded)
            .astype(jnp.bfloat16))
    bf_p = bf_folded.astype(jnp.float32).reshape(1)

    cost = pl.CostEstimate(
        flops=2 * BP * DP * DP * N_HIDDEN_LAYERS + 2 * BP * DP,
        transcendentals=0,
        bytes_accessed=(x_p.size * 2 + W_p.size * 2 + b_p.size * 4
                        + wf_p.size * 2 + 4 + BP * 4),
    )

    # All 5 folded (DP, DP) bf16 weights stay VMEM-resident (constant index_maps);
    # default double-buffering means 2x that footprint. Raise the scoped-VMEM cap only
    # when a large D actually needs it (v5e/v6e have 128 MiB physical), capped at 96 MiB.
    resident = W_p.size * 2 + b_p.size * 4 + wf_p.size * 2
    streamed = 2 * (tb * DP * 2) + 2 * (tb * 4)           # x tile + out row, 2 buffers
    vmem_limit = int(min(max(32 << 20, 2 * resident + streamed + (4 << 20)), 96 << 20))
    # TODO(synk): on v7x (64 MiB VMEM) with DP in the multi-thousand range, restructure
    #             to a (batch, layer) grid streaming one (DP, DP) weight per step
    #             instead of keeping all 5 resident.

    kernel = functools.partial(appnet_kernel, n_split=n_split)
    out_row = pl.pallas_call(
        kernel,
        out_shape=jax.ShapeDtypeStruct((1, BP), jnp.float32),
        grid=(BP // tb,),
        in_specs=[
            pl.BlockSpec((tb, DP), lambda i: (i, 0)),                       # x tile
            pl.BlockSpec((N_HIDDEN_LAYERS, DP, DP), lambda i: (0, 0, 0)),   # weights
            pl.BlockSpec((N_HIDDEN_LAYERS, 1, DP), lambda i: (0, 0, 0)),    # biases
            pl.BlockSpec((1, DP), lambda i: (0, 0)),                        # final w row
            pl.BlockSpec(memory_space=pltpu.MemorySpace.SMEM),              # final bias
        ],
        out_specs=pl.BlockSpec((1, tb), lambda i: (0, i)),
        compiler_params=pltpu.CompilerParams(
            dimension_semantics=("parallel",),        # megacore split on v7x
            vmem_limit_bytes=vmem_limit,
        ),
        cost_estimate=cost,
    )(x_p, W_p, b_p, wf_p, bf_p)
    return out_row[0, :B].reshape(B, 1)


def init_params(key, D):
    """Deterministic synthetic parameters (PyTorch-style uniform Linear init)."""
    keys = jax.random.split(key, 8)
    bound = 1.0 / jnp.sqrt(jnp.float32(D))
    W = jax.random.uniform(keys[0], (N_HIDDEN_LAYERS, D, D), jnp.float32, -bound, bound)
    b = jax.random.uniform(keys[1], (N_HIDDEN_LAYERS, D), jnp.float32, -bound, bound)
    gamma = 1.0 + 0.1 * jax.random.normal(keys[2], (N_HIDDEN_LAYERS, D), jnp.float32)
    beta = 0.1 * jax.random.normal(keys[3], (N_HIDDEN_LAYERS, D), jnp.float32)
    run_mean = 0.1 * jax.random.normal(keys[4], (N_HIDDEN_LAYERS, D), jnp.float32)
    run_var = jax.random.uniform(keys[5], (N_HIDDEN_LAYERS, D), jnp.float32, 0.5, 1.5)
    Wf = jax.random.uniform(keys[6], (D, 1), jnp.float32, -bound, bound)
    bf = jax.random.uniform(keys[7], (1,), jnp.float32, -bound, bound)
    return (W, b, gamma, beta, run_mean, run_var, Wf, bf)


def appnet_reference(x, params):
    """Pure-JAX f32 reference for correctness checking (eval-mode semantics)."""
    W, b, gamma, beta, run_mean, run_var, Wf, bf = params
    scale = gamma / jnp.sqrt(run_var + BN_EPS)
    shift = beta - run_mean * scale
    h = x
    for l in range(N_HIDDEN_LAYERS):
        h = jnp.maximum(h @ W[l] + b[l], 0.0) * scale[l] + shift[l]
    return h @ Wf + bf


if __name__ == "__main__":
    B, D = 8, 32  # batch=8, input_size=32 (Linear on 2-D (N, C) input)
    key = jax.random.PRNGKey(0)
    kx, kp = jax.random.split(key)
    x = jax.random.normal(kx, (B, D), jnp.float32)
    params = init_params(kp, D)

    out = jax.block_until_ready(appnet_forward(x, params))
    ref = appnet_reference(x, params)

    assert out.shape == (B, 1), out.shape
    assert bool(jnp.all(jnp.isfinite(out)))
    # bf16 MXU operands -> validate against the f32 reference with relaxed tolerance.
    assert jnp.allclose(out, ref, atol=5e-2, rtol=5e-2), (out, ref)
    print("KERNEL_OK")
</pallas_src>

<mosaic_0001>
module attributes {stable_mosaic.version = 11 : i64} {
  func.func @appnet_kernel(%arg0: i32, %arg1: memref<16x128xbf16, #tpu.memory_space<vmem>>, %arg2: memref<5x128x128xbf16, #tpu.memory_space<vmem>>, %arg3: memref<5x1x128xf32, #tpu.memory_space<vmem>>, %arg4: memref<1x128xbf16, #tpu.memory_space<vmem>>, %arg5: memref<1xf32, #tpu.memory_space<smem>>, %arg6: memref<1x16xf32, #tpu.memory_space<vmem>>) attributes {dimension_semantics = [#tpu.dimension_semantics<parallel>], iteration_bounds = array<i64: 1>, scalar_prefetch = 0 : i64, scratch_operands = 0 : i64, tpu.core_type = #tpu.core_type<tc>, window_params = [{transform_indices = @transform_0, window_bounds = array<i64: 16, 128>}, {pipeline_mode = #tpu.pipeline_mode<synchronous>, transform_indices = @transform_1, window_bounds = array<i64: 5, 128, 128>}, {pipeline_mode = #tpu.pipeline_mode<synchronous>, transform_indices = @transform_2, window_bounds = array<i64: 5, 1, 128>}, {pipeline_mode = #tpu.pipeline_mode<synchronous>, transform_indices = @transform_3, window_bounds = array<i64: 1, 128>}, {transform_indices = @transform_4, window_bounds = array<i64: 1>}, {transform_indices = @transform_5, window_bounds = array<i64: 1, 16>}]} {
    %c0 = arith.constant 0 : index
    %0 = memref.load %arg5[%c0] : memref<1xf32, #tpu.memory_space<smem>>
    %c0_0 = arith.constant 0 : index
    %c0_1 = arith.constant 0 : index
    %1 = vector.load %arg1[%c0_0, %c0_1] : memref<16x128xbf16, #tpu.memory_space<vmem>>, vector<16x128xbf16>
    %c0_2 = arith.constant 0 : index
    %c0_3 = arith.constant 0 : index
    %c0_4 = arith.constant 0 : index
    %2 = vector.load %arg2[%c0_2, %c0_3, %c0_4] : memref<5x128x128xbf16, #tpu.memory_space<vmem>>, vector<1x128x128xbf16>
    %3 = vector.shape_cast %2 : vector<1x128x128xbf16> to vector<128x128xbf16>
    %cst = arith.constant dense<0.000000e+00> : vector<16x128xf32>
    %4 = tpu.matmul %1, %3, %cst {dimension_numbers = #tpu.dot_dimension_numbers<[1], [0], [0], [1], [0, 0, 1, 1], [], []>} : vector<16x128xbf16>, vector<128x128xbf16>, vector<16x128xf32> -> vector<16x128xf32>
    %c0_5 = arith.constant 0 : index
    %c0_6 = arith.constant 0 : index
    %c0_7 = arith.constant 0 : index
    %5 = vector.load %arg3[%c0_5, %c0_6, %c0_7] : memref<5x1x128xf32, #tpu.memory_space<vmem>>, vector<1x1x128xf32>
    %6 = vector.shape_cast %5 : vector<1x1x128xf32> to vector<1x128xf32>
    %7 = vector.broadcast %6 : vector<1x128xf32> to vector<16x128xf32>
    %8 = arith.addf %4, %7 : vector<16x128xf32>
    %cst_8 = arith.constant 0.000000e+00 : f32
    %9 = vector.broadcast %cst_8 : f32 to vector<16x128xf32>
    %10 = arith.maximumf %8, %9 : vector<16x128xf32>
    %11 = arith.truncf %10 : vector<16x128xf32> to vector<16x128xbf16>
    %c1 = arith.constant 1 : index
    %c0_9 = arith.constant 0 : index
    %c0_10 = arith.constant 0 : index
    %12 = vector.load %arg2[%c1, %c0_9, %c0_10] : memref<5x128x128xbf16, #tpu.memory_space<vmem>>, vector<1x128x128xbf16>
    %13 = vector.shape_cast %12 : vector<1x128x128xbf16> to vector<128x128xbf16>
    %cst_11 = arith.constant dense<0.000000e+00> : vector<16x128xf32>
    %14 = tpu.matmul %11, %13, %cst_11 {dimension_numbers = #tpu.dot_dimension_numbers<[1], [0], [0], [1], [0, 0, 1, 1], [], []>} : vector<16x128xbf16>, vector<128x128xbf16>, vector<16x128xf32> -> vector<16x128xf32>
    %c1_12 = arith.constant 1 : index
    %c0_13 = arith.constant 0 : index
    %c0_14 = arith.constant 0 : index
    %15 = vector.load %arg3[%c1_12, %c0_13, %c0_14] : memref<5x1x128xf32, #tpu.memory_space<vmem>>, vector<1x1x128xf32>
    %16 = vector.shape_cast %15 : vector<1x1x128xf32> to vector<1x128xf32>
    %17 = vector.broadcast %16 : vector<1x128xf32> to vector<16x128xf32>
    %18 = arith.addf %14, %17 : vector<16x128xf32>
    %cst_15 = arith.constant 0.000000e+00 : f32
    %19 = vector.broadcast %cst_15 : f32 to vector<16x128xf32>
    %20 = arith.maximumf %18, %19 : vector<16x128xf32>
    %21 = arith.truncf %20 : vector<16x128xf32> to vector<16x128xbf16>
    %c2 = arith.constant 2 : index
    %c0_16 = arith.constant 0 : index
    %c0_17 = arith.constant 0 : index
    %22 = vector.load %arg2[%c2, %c0_16, %c0_17] : memref<5x128x128xbf16, #tpu.memory_space<vmem>>, vector<1x128x128xbf16>
    %23 = vector.shape_cast %22 : vector<1x128x128xbf16> to vector<128x128xbf16>
    %cst_18 = arith.constant dense<0.000000e+00> : vector<16x128xf32>
    %24 = tpu.matmul %21, %23, %cst_18 {dimension_numbers = #tpu.dot_dimension_numbers<[1], [0], [0], [1], [0, 0, 1, 1], [], []>} : vector<16x128xbf16>, vector<128x128xbf16>, vector<16x128xf32> -> vector<16x128xf32>
    %c2_19 = arith.constant 2 : index
    %c0_20 = arith.constant 0 : index
    %c0_21 = arith.constant 0 : index
    %25 = vector.load %arg3[%c2_19, %c0_20, %c0_21] : memref<5x1x128xf32, #tpu.memory_space<vmem>>, vector<1x1x128xf32>
    %26 = vector.shape_cast %25 : vector<1x1x128xf32> to vector<1x128xf32>
    %27 = vector.broadcast %26 : vector<1x128xf32> to vector<16x128xf32>
    %28 = arith.addf %24, %27 : vector<16x128xf32>
    %cst_22 = arith.constant 0.000000e+00 : f32
    %29 = vector.broadcast %cst_22 : f32 to vector<16x128xf32>
    %30 = arith.maximumf %28, %29 : vector<16x128xf32>
    %31 = arith.truncf %30 : vector<16x128xf32> to vector<16x128xbf16>
    %c3 = arith.constant 3 : index
    %c0_23 = arith.constant 0 : index
    %c0_24 = arith.constant 0 : index
    %32 = vector.load %arg2[%c3, %c0_23, %c0_24] : memref<5x128x128xbf16, #tpu.memory_space<vmem>>, vector<1x128x128xbf16>
    %33 = vector.shape_cast %32 : vector<1x128x128xbf16> to vector<128x128xbf16>
    %cst_25 = arith.constant dense<0.000000e+00> : vector<16x128xf32>
    %34 = tpu.matmul %31, %33, %cst_25 {dimension_numbers = #tpu.dot_dimension_numbers<[1], [0], [0], [1], [0, 0, 1, 1], [], []>} : vector<16x128xbf16>, vector<128x128xbf16>, vector<16x128xf32> -> vector<16x128xf32>
    %c3_26 = arith.constant 3 : index
    %c0_27 = arith.constant 0 : index
    %c0_28 = arith.constant 0 : index
    %35 = vector.load %arg3[%c3_26, %c0_27, %c0_28] : memref<5x1x128xf32, #tpu.memory_space<vmem>>, vector<1x1x128xf32>
    %36 = vector.shape_cast %35 : vector<1x1x128xf32> to vector<1x128xf32>
    %37 = vector.broadcast %36 : vector<1x128xf32> to vector<16x128xf32>
    %38 = arith.addf %34, %37 : vector<16x128xf32>
    %cst_29 = arith.constant 0.000000e+00 : f32
    %39 = vector.broadcast %cst_29 : f32 to vector<16x128xf32>
    %40 = arith.maximumf %38, %39 : vector<16x128xf32>
    %41 = arith.truncf %40 : vector<16x128xf32> to vector<16x128xbf16>
    %c4 = arith.constant 4 : index
    %c0_30 = arith.constant 0 : index
    %c0_31 = arith.constant 0 : index
    %42 = vector.load %arg2[%c4, %c0_30, %c0_31] : memref<5x128x128xbf16, #tpu.memory_space<vmem>>, vector<1x128x128xbf16>
    %43 = vector.shape_cast %42 : vector<1x128x128xbf16> to vector<128x128xbf16>
    %cst_32 = arith.constant dense<0.000000e+00> : vector<16x128xf32>
    %44 = tpu.matmul %41, %43, %cst_32 {dimension_numbers = #tpu.dot_dimension_numbers<[1], [0], [0], [1], [0, 0, 1, 1], [], []>} : vector<16x128xbf16>, vector<128x128xbf16>, vector<16x128xf32> -> vector<16x128xf32>
    %c4_33 = arith.constant 4 : index
    %c0_34 = arith.constant 0 : index
    %c0_35 = arith.constant 0 : index
    %45 = vector.load %arg3[%c4_33, %c0_34, %c0_35] : memref<5x1x128xf32, #tpu.memory_space<vmem>>, vector<1x1x128xf32>
    %46 = vector.shape_cast %45 : vector<1x1x128xf32> to vector<1x128xf32>
    %47 = vector.broadcast %46 : vector<1x128xf32> to vector<16x128xf32>
    %48 = arith.addf %44, %47 : vector<16x128xf32>
    %cst_36 = arith.constant 0.000000e+00 : f32
    %49 = vector.broadcast %cst_36 : f32 to vector<16x128xf32>
    %50 = arith.maximumf %48, %49 : vector<16x128xf32>
    %51 = arith.truncf %50 : vector<16x128xf32> to vector<16x128xbf16>
    %c0_37 = arith.constant 0 : index
    %c0_38 = arith.constant 0 : index
    %52 = vector.load %arg4[%c0_37, %c0_38] : memref<1x128xbf16, #tpu.memory_space<vmem>>, vector<1x128xbf16>
    %cst_39 = arith.constant dense<0.000000e+00> : vector<1x16xf32>
    %53 = tpu.matmul %52, %51, %cst_39 {dimension_numbers = #tpu.dot_dimension_numbers<[1], [1], [0], [0], [0, 0, 1, 0], [], []>} : vector<1x128xbf16>, vector<16x128xbf16>, vector<1x16xf32> -> vector<1x16xf32>
    %54 = vector.broadcast %0 : f32 to vector<1x16xf32>
    %55 = arith.addf %53, %54 : vector<1x16xf32>
    %c0_40 = arith.constant 0 : index
    %c0_41 = arith.constant 0 : index
    %56 = vector.load %arg6[%c0_40, %c0_41] : memref<1x16xf32, #tpu.memory_space<vmem>>, vector<1x16xf32>
    tpu.vector_store %arg6[%c0_40, %c0_41], %55 {strides = array<i32>} : memref<1x16xf32, #tpu.memory_space<vmem>>, vector<1x16xf32>,
    return
  }
  func.func @transform_0(%arg0: i32) -> (i32, i32) {
    %c0_i32 = arith.constant 0 : i32
    %c0_i32_0 = arith.constant 0 : i32
    return %arg0, %c0_i32 : i32, i32
  }
  func.func @transform_1(%arg0: i32) -> (i32, i32, i32) {
    %c0_i32 = arith.constant 0 : i32
    %c0_i32_0 = arith.constant 0 : i32
    %c0_i32_1 = arith.constant 0 : i32
    %c0_i32_2 = arith.constant 0 : i32
    return %c0_i32, %c0_i32_0, %c0_i32_1 : i32, i32, i32
  }
  func.func @transform_2(%arg0: i32) -> (i32, i32, i32) {
    %c0_i32 = arith.constant 0 : i32
    %c0_i32_0 = arith.constant 0 : i32
    %c0_i32_1 = arith.constant 0 : i32
    %c0_i32_2 = arith.constant 0 : i32
    return %c0_i32, %c0_i32_0, %c0_i32_1 : i32, i32, i32
  }
  func.func @transform_3(%arg0: i32) -> (i32, i32) {
    %c0_i32 = arith.constant 0 : i32
    %c0_i32_0 = arith.constant 0 : i32
    %c0_i32_1 = arith.constant 0 : i32
    return %c0_i32, %c0_i32_0 : i32, i32
  }
  func.func @transform_4(%arg0: i32) -> i32 {
    %c0_i32 = arith.constant 0 : i32
    %c0_i32_0 = arith.constant 0 : i32
    return %c0_i32 : i32
  }
  func.func @transform_5(%arg0: i32) -> (i32, i32) {
    %c0_i32 = arith.constant 0 : i32
    %c0_i32_0 = arith.constant 0 : i32
    return %c0_i32, %arg0 : i32, i32
  }
}

</mosaic_0001>

<bundles_post_ra>
// kernel: tpu_custom_call.1
= control target key start
LH: loop header
LB: loop body
LE: loop exit
PB: predicated region body
PF: predicated region fallthrough
CT: control target
= control target key end

     0   :  { %11 = vsyncpa [#allocation4], 0  ;;  %s1173_s0 = inlined_call_operand.hbm [shape: bf16[16,128], index: 0, kind: input, shape index: {}]   ;;  %s1174_s1 = inlined_call_operand.hbm [shape: bf16[5,128,128], index: 1, kind: input, shape index: {}]   ;;  %s1175_s2 = inlined_call_operand.vmem [shape: f32[5,1,128], index: 2, kind: input, shape index: {}]   ;;  %s1176_s3 = inlined_call_operand.vmem [shape: bf16[1,128], index: 3, kind: input, shape index: {}]   ;;  %s1177_s4 = inlined_call_operand.<no memory space> [shape: f32[1], index: 4, kind: input, shape index: {}]   ;;  %s1178_s5 = inlined_call_operand.hbm [shape: f32[1,16], index: 5, kind: output, shape index: {}]  }
   0x1   :  { %12 = vsyncpa [#allocation7], 0 }
   0x2   :  { %13 = vsyncpa [#allocation5], 0  ;;  %s1026_s18 = smov [#allocation3]   ;;  %s954_s22 = scalar_lea.hbm %s1173_s0, 128 }
   0x3   :  { %s19_s19 = sshll.u32 %s1026_s18, 4  ;;  %p955_p0 = scmp.ne.s32.totalorder %s1173_s0, %s954_s22  ;;  %s20_s19 = int_to_ptr.vmem [resolvable:$true] %s19_s19 }
   0x4   :  { %p958_p1 = scmp.lt.u32.totalorder %s954_s22, %s1173_s0 }
   0x6   :  { %p960_p2 = pnand %p958_p1, %p955_p0 }
   0x8   :  { %963 = shalt.err (!%p960_p2)
}
   0x9   :  { %s964_s27 = scalar_lea.vmem %s20_s19, 128  ;;  %p969_p4 = scmp.lt.s32.totalorder %s20_s19, %s20_s19 }
   0xa   :  { %p965_p3 = scmp.ne.s32.totalorder %s20_s19, %s964_s27  ;;  %p970_p5 = scmp.lt.s32.totalorder %s964_s27, %s964_s27 }
   0xc   :  { %p971_p6 = por %p970_p5, %p969_p4 }
   0xe   :  { %p972_p7 = pnand %p971_p6, %p965_p3 }
  0x10   :  { %975 = shalt.err (!%p972_p7)
}
  0x11   :  { %s1027_s28 = smov 64   ;;  %s1028_s29 = smov 4  }
  0x12   :  { %25 = dma.hbm_to_vmem [thread:$0]  %s1173_s0, 128, %s20_s19, [#allocation4], %s1027_s28, %s1027_s28, %s1028_s29  }
  0x13   :  { %s1029_s7 = smov [#allocation6]   ;;  %s976_s11 = scalar_lea.hbm %s1174_s1, 5120 }
  0x14   :  { %s31_s8 = sshll.u32 %s1029_s7, 4  ;;  %p977_p8 = scmp.ne.s32.totalorder %s1174_s1, %s976_s11  ;;  %s32_s8 = int_to_ptr.vmem [resolvable:$true] %s31_s8 }
  0x15   :  { %p980_p9 = scmp.lt.u32.totalorder %s976_s11, %s1174_s1 }
  0x17   :  { %p982_p10 = pnand %p980_p9, %p977_p8 }
  0x19   :  { %985 = shalt.err (!%p982_p10)
}
  0x1a   :  { %s986_s16 = scalar_lea.vmem %s32_s8, 5120  ;;  %p991_p12 = scmp.lt.s32.totalorder %s32_s8, %s32_s8 }
  0x1b   :  { %p987_p11 = scmp.ne.s32.totalorder %s32_s8, %s986_s16  ;;  %p992_p13 = scmp.lt.s32.totalorder %s986_s16, %s986_s16 }
  0x1d   :  { %p993_p0 = por %p992_p13, %p991_p12 }
  0x1f   :  { %p994_p1 = pnand %p993_p0, %p987_p11 }
  0x21   :  { %997 = shalt.err (!%p994_p1)
}
  0x22   :  { %37 = dma.hbm_to_vmem [thread:$0]  %s1174_s1, 5120, %s32_s8, [#allocation7], %s1027_s28, %s1027_s28, %s1028_s29  }
  0x23   :  { %1020 = dma.done.wait [#allocation4], 128  }
  0x24   :  { %1021 = vsyncadd [#allocation4], 4294967168 }
  0x25   :  { %1022 = dma.done.wait [#allocation7], 5120  }
  0x26   :  { %1023 = vsyncadd [#allocation7], 4294962176  ;;  %v1030_v0 = vmov 0.0   ;;  %vm1031_vm0 = vmmov 0   ;;  %v913_v1 = vld [vmem:[#allocation6] sm:$0xff]   ;;  %v914_v2 = vld [vmem:[#allocation6 + $0x8] sm:$0xff]  }
  0x27   :  { %800 = vmatprep.subr.bf16.mxu0 %v1030_v0  ;;  %816 = vmatprep.mubr.msk.bf16.mxu0 %vm1031_vm0, %v1030_v0  ;;  %v915_v3 = vld [vmem:[#allocation6 + $0x10] sm:$0xff]   ;;  %v922_v4 = vld [vmem:[#allocation6 + $0x40] sm:$0xff]   ;;  %v916_v5 = vld [vmem:[#allocation6 + $0x18] sm:$0xff]   ;;  %vm685_vm1 = vcmask 122880  }
  0x28   :  { %820 = vmatprep.subr.bf16.mxu1 %v1030_v0  ;;  %836 = vmatprep.mubr.msk.bf16.mxu1 %vm1031_vm0, %v1030_v0  ;;  %v923_v6 = vld [vmem:[#allocation6 + $0x48] sm:$0xff]   ;;  %v917_v7 = vld [vmem:[#allocation6 + $0x20] sm:$0xff]   ;;  %v924_v8 = vld [vmem:[#allocation6 + $0x50] sm:$0xff]  }
  0x29   :  { %801 = vmatpush3.bf16.msra.mxu0 %v913_v1  ;;  %821 = vmatpush3.bf16.msra.mxu1 %v922_v4  ;;  %v918_v9 = vld [vmem:[#allocation6 + $0x28] sm:$0xff]   ;;  %v925_v10 = vld [vmem:[#allocation6 + $0x58] sm:$0xff]   ;;  %v919_v11 = vld [vmem:[#allocation6 + $0x30] sm:$0xff]  }
  0x2a   :  { %802 = vmatprep.subr.bf16.mxu0 %v1030_v0  ;;  %822 = vmatprep.subr.bf16.mxu1 %v1030_v0  ;;  %v926_v12 = vld [vmem:[#allocation6 + $0x60] sm:$0xff]   ;;  %v920_v13 = vld [vmem:[#allocation6 + $0x38] sm:$0xff]   ;;  %v927_v14 = vld [vmem:[#allocation6 + $0x68] sm:$0xff]  }
  0x2b   :  { %v921_v15 = vld [vmem:[#allocation3] sm:$0xff]   ;;  %v928_v16 = vld [vmem:[#allocation6 + $0x70] sm:$0xff]   ;;  %v930_v18 = vld [vmem:[#allocation6 + $0x80] sm:$0xff]  }
  0x2c   :  { %v929_v17 = vld [vmem:[#allocation6 + $0x78] sm:$0xff]   ;;  %v931_v19 = vld [vmem:[#allocation6 + $0x88] sm:$0xff]   ;;  %v932_v20 = vld [vmem:[#allocation6 + $0x90] sm:$0xff]  }
  0x2d   :  { %803 = vmatpush3.bf16.msra.mxu0 %v914_v2  ;;  %823 = vmatpush3.bf16.msra.mxu1 %v923_v6  ;;  %v933_v21 = vld [vmem:[#allocation6 + $0x98] sm:$0xff]   ;;  %v934_v22 = vld [vmem:[#allocation6 + $0xa0] sm:$0xff]   ;;  %v935_v23 = vld [vmem:[#allocation6 + $0xa8] sm:$0xff]  }
  0x2e   :  { %804 = vmatprep.subr.bf16.mxu0 %v1030_v0  ;;  %824 = vmatprep.subr.bf16.mxu1 %v1030_v0  ;;  %v703_v24 = vld [vmem:[%s1175_s2] ss:$0 sm:$0xff]  ;;  %v936_v34 = vld [vmem:[#allocation6 + $0xb0] sm:$0xff]   ;;  %v938_v36 = vld [vmem:[#allocation6 + $0xc0] sm:$0xff]  }
  0x2f   :  { %v937_v35 = vld [vmem:[#allocation6 + $0xb8] sm:$0xff]   ;;  %v939_v37 = vld [vmem:[#allocation6 + $0xc8] sm:$0xff]   ;;  %v940_v38 = vld [vmem:[#allocation6 + $0xd0] sm:$0xff]  }
  0x30   :  { %v941_v39 = vld [vmem:[#allocation6 + $0xd8] sm:$0xff]   ;;  %v942_v40 = vld [vmem:[#allocation6 + $0xe0] sm:$0xff]   ;;  %v943_v41 = vld [vmem:[#allocation6 + $0xe8] sm:$0xff]  }
  0x31   :  { %805 = vmatpush3.bf16.msra.mxu0 %v915_v3  ;;  %825 = vmatpush3.bf16.msra.mxu1 %v924_v8  ;;  %v714_v42 = vld [vmem:[%s1175_s2 + $0x1] ss:$0 sm:$0xff]  ;;  %v944_v52 = vld [vmem:[#allocation6 + $0xf0] sm:$0xff]   ;;  %v946_v54 = vld [vmem:[#allocation6 + $0x100] sm:$0xff]  }
  0x32   :  { %806 = vmatprep.subr.bf16.mxu0 %v1030_v0  ;;  %826 = vmatprep.subr.bf16.mxu1 %v1030_v0  ;;  %v945_v53 = vld [vmem:[#allocation6 + $0xf8] sm:$0xff]   ;;  %v947_v55 = vld [vmem:[#allocation6 + $0x108] sm:$0xff]   ;;  %v948_v56 = vld [vmem:[#allocation6 + $0x110] sm:$0xff]  }
  0x33   :  { %v949_v57 = vld [vmem:[#allocation6 + $0x118] sm:$0xff]   ;;  %v950_v58 = vld [vmem:[#allocation6 + $0x120] sm:$0xff]   ;;  %v951_v59 = vld [vmem:[#allocation6 + $0x128] sm:$0xff]  }
  0x34   :  { %v724_v60 = vld [vmem:[%s1175_s2 + $0x2] ss:$0 sm:$0xff] }
  0x35   :  { %807 = vmatpush3.bf16.msra.mxu0 %v916_v5  ;;  %827 = vmatpush3.bf16.msra.mxu1 %v925_v10  ;;  %v953_v8 = vld [vmem:[#allocation6 + $0x138] sm:$0xff]  }
  0x36   :  { %808 = vmatprep.subr.bf16.mxu0 %v1030_v0  ;;  %828 = vmatprep.subr.bf16.mxu1 %v1030_v0 }
  0x39   :  { %809 = vmatpush3.bf16.msra.mxu0 %v917_v7  ;;  %829 = vmatpush3.bf16.msra.mxu1 %v926_v12  ;;  %v952_v7 = vld [vmem:[#allocation6 + $0x130] sm:$0xff]  }
  0x3a   :  { %810 = vmatprep.subr.bf16.mxu0 %v1030_v0  ;;  %830 = vmatprep.subr.bf16.mxu1 %v1030_v0 }
  0x3d   :  { %811 = vmatpush3.bf16.msra.mxu0 %v918_v9  ;;  %831 = vmatpush3.bf16.msra.mxu1 %v927_v14  ;;  %v734_v9 = vld [vmem:[%s1175_s2 + $0x3] ss:$0 sm:$0xff] }
  0x3e   :  { %812 = vmatprep.subr.bf16.mxu0 %v1030_v0  ;;  %832 = vmatprep.subr.bf16.mxu1 %v1030_v0 }
  0x41   :  { %813 = vmatpush3.bf16.msra.mxu0 %v919_v11  ;;  %833 = vmatpush3.bf16.msra.mxu1 %v928_v16 }
  0x42   :  { %814 = vmatprep.subr.bf16.mxu0 %v1030_v0  ;;  %834 = vmatprep.subr.bf16.mxu1 %v1030_v0 }
  0x45   :  { %815 = vmatpush3.bf16.msra.mxu0 %v920_v13  ;;  %835 = vmatpush3.bf16.msra.mxu1 %v929_v17 }
  0x46   :  { %840 = vmatprep.subr.bf16.mxu0 %v1030_v0  ;;  %860 = vmatprep.subr.bf16.mxu1 %v1030_v0 }
  0x48   :  { %817 = vmatmul.mubr.bf16.vlgmr.msra.gmra.mrb[0].mxu0 %v921_v15 }
  0x49   :  { %856 = vmatprep.mubr.msk.bf16.mxu0 %vm1031_vm0, %v1030_v0  ;;  %841 = vmatpush3.bf16.msra.mxu0 %v930_v18 }
  0x4a   :  { %842 = vmatprep.subr.bf16.mxu0 %v1030_v0 }
  0x4d   :  { %843 = vmatpush3.bf16.msra.mxu0 %v931_v19 }
  0x4e   :  { %844 = vmatprep.subr.bf16.mxu0 %v1030_v0 }
  0x51   :  { %845 = vmatpush3.bf16.msra.mxu0 %v932_v20 }
  0x52   :  { %846 = vmatprep.subr.bf16.mxu0 %v1030_v0 }
  0x55   :  { %847 = vmatpush3.bf16.msra.mxu0 %v933_v21 }
  0x56   :  { %848 = vmatprep.subr.bf16.mxu0 %v1030_v0 }
  0x59   :  { %849 = vmatpush3.bf16.msra.mxu0 %v934_v22 }
  0x5a   :  { %850 = vmatprep.subr.bf16.mxu0 %v1030_v0 }
  0x5d   :  { %851 = vmatpush3.bf16.msra.mxu0 %v935_v23 }
  0x5e   :  { %852 = vmatprep.subr.bf16.mxu0 %v1030_v0 }
  0x61   :  { %853 = vmatpush3.bf16.msra.mxu0 %v936_v34 }
  0x62   :  { %854 = vmatprep.subr.bf16.mxu0 %v1030_v0 }
  0x65   :  { %855 = vmatpush3.bf16.msra.mxu0 %v937_v35 }
  0x66   :  { %880 = vmatprep.subr.bf16.mxu0 %v1030_v0 }
 0x11b   :  { %v165_v25 = vpop.f32.mrb[0].mxu0 }
 0x11c   :  { %v166_v26 = vadd.f32 %v703_v24, %v165_v25  ;;  %v818_v27 = vpop.f32.mrb[1].mxu0 }
 0x11d   :  { %v168_v28 = vpop.f32.mrb[2].mxu0 }
 0x11e   :  { %v169_v29 = vadd.f32 %v703_v24, %v168_v28  ;;  %v819_v30 = vpop.f32.mrb[3].mxu0  ;;  %v172_v31 = vmax.f32 %v166_v26, 0.0  ;;  %v643_v28 = vld [vmem:[%s1176_s3] sm:$0x1] }
 0x120   :  { %v173_v32 = vmax.f32 %v169_v29, 0.0  ;;  %v644_v29 = vstv %s1177_s4 }
 0x122   :  { %v174_v33 = vpack.c.bf16 %v173_v32, %v172_v31 }
 0x124   :  { %837 = vmatmul.mubr.bf16.vlgmr.msra.gmra.mrb[0].mxu1 %v174_v33 }
 0x125   :  { %876 = vmatprep.mubr.msk.bf16.mxu1 %vm1031_vm0, %v1030_v0  ;;  %861 = vmatpush3.bf16.msra.mxu1 %v938_v36 }
 0x126   :  { %862 = vmatprep.subr.bf16.mxu1 %v1030_v0 }
 0x129   :  { %863 = vmatpush3.bf16.msra.mxu1 %v939_v37 }
 0x12a   :  { %864 = vmatprep.subr.bf16.mxu1 %v1030_v0 }
 0x12d   :  { %865 = vmatpush3.bf16.msra.mxu1 %v940_v38 }
 0x12e   :  { %866 = vmatprep.subr.bf16.mxu1 %v1030_v0 }
 0x131   :  { %867 = vmatpush3.bf16.msra.mxu1 %v941_v39 }
 0x132   :  { %868 = vmatprep.subr.bf16.mxu1 %v1030_v0 }
 0x135   :  { %869 = vmatpush3.bf16.msra.mxu1 %v942_v40 }
 0x136   :  { %870 = vmatprep.subr.bf16.mxu1 %v1030_v0 }
 0x139   :  { %871 = vmatpush3.bf16.msra.mxu1 %v943_v41 }
 0x13a   :  { %872 = vmatprep.subr.bf16.mxu1 %v1030_v0 }
 0x13d   :  { %873 = vmatpush3.bf16.msra.mxu1 %v944_v52 }
 0x13e   :  { %874 = vmatprep.subr.bf16.mxu1 %v1030_v0 }
 0x141   :  { %875 = vmatpush3.bf16.msra.mxu1 %v945_v53 }
 0x142   :  { %900 = vmatprep.subr.bf16.mxu1 %v1030_v0 }
 0x1f7   :  { %v282_v43 = vpop.f32.mrb[0].mxu1 }
 0x1f8   :  { %v283_v44 = vadd.f32 %v714_v42, %v282_v43  ;;  %v838_v45 = vpop.f32.mrb[1].mxu1 }
 0x1f9   :  { %v285_v46 = vpop.f32.mrb[2].mxu1 }
 0x1fa   :  { %v286_v47 = vadd.f32 %v714_v42, %v285_v46  ;;  %v839_v48 = vpop.f32.mrb[3].mxu1  ;;  %v289_v49 = vmax.f32 %v283_v44, 0.0 }
 0x1fc   :  { %v290_v50 = vmax.f32 %v286_v47, 0.0 }
 0x1fe   :  { %v291_v51 = vpack.c.bf16 %v290_v50, %v289_v49 }
 0x200   :  { %857 = vmatmul.mubr.bf16.vlgmr.msra.gmra.mrb[4].mxu0 %v291_v51 }
 0x201   :  { %896 = vmatprep.mubr.msk.bf16.mxu0 %vm1031_vm0, %v1030_v0  ;;  %881 = vmatpush3.bf16.msra.mxu0 %v946_v54 }
 0x202   :  { %882 = vmatprep.subr.bf16.mxu0 %v1030_v0 }
 0x205   :  { %883 = vmatpush3.bf16.msra.mxu0 %v947_v55 }
 0x206   :  { %884 = vmatprep.subr.bf16.mxu0 %v1030_v0 }
 0x209   :  { %885 = vmatpush3.bf16.msra.mxu0 %v948_v56 }
 0x20a   :  { %886 = vmatprep.subr.bf16.mxu0 %v1030_v0 }
 0x20d   :  { %887 = vmatpush3.bf16.msra.mxu0 %v949_v57 }
 0x20e   :  { %888 = vmatprep.subr.bf16.mxu0 %v1030_v0 }
 0x211   :  { %889 = vmatpush3.bf16.msra.mxu0 %v950_v58 }
 0x212   :  { %890 = vmatprep.subr.bf16.mxu0 %v1030_v0 }
 0x215   :  { %891 = vmatpush3.bf16.msra.mxu0 %v951_v59 }
 0x216   :  { %892 = vmatprep.subr.bf16.mxu0 %v1030_v0 }
 0x219   :  { %893 = vmatpush3.bf16.msra.mxu0 %v952_v7 }
 0x21a   :  { %894 = vmatprep.subr.bf16.mxu0 %v1030_v0 }
 0x21d   :  { %895 = vmatpush3.bf16.msra.mxu0 %v953_v8 }
 0x2d3   :  { %v399_v61 = vpop.f32.mrb[4].mxu0 }
 0x2d4   :  { %v400_v62 = vadd.f32 %v724_v60, %v399_v61  ;;  %v858_v63 = vpop.f32.mrb[5].mxu0 }
 0x2d5   :  { %v402_v1 = vpop.f32.mrb[6].mxu0 }
 0x2d6   :  { %v403_v2 = vadd.f32 %v724_v60, %v402_v1  ;;  %v859_v3 = vpop.f32.mrb[7].mxu0  ;;  %v406_v4 = vmax.f32 %v400_v62, 0.0 }
 0x2d8   :  { %v407_v5 = vmax.f32 %v403_v2, 0.0 }
 0x2da   :  { %v408_v6 = vpack.c.bf16 %v407_v5, %v406_v4 }
 0x2dc   :  { %877 = vmatmul.mubr.bf16.vlgmr.msra.gmra.mrb[4].mxu1 %v408_v6 }
 0x2dd   :  { %902 = vmatprep.mubr.msk.bf16.mxu1 %vm1031_vm0, %v1030_v0  ;;  %v744_v0 = vld [vmem:[%s1175_s2 + $0x4] ss:$0 sm:$0xff]  ;;  %s1032_s2 = smov [#allocation8]  }
 0x2de   :  { %s693_s6 = sshll.u32 %s1032_s2, 4  ;;  %s694_s6 = int_to_ptr.vmem [resolvable:$true] %s693_s6 }
 0x2df   :  { %s998_s7 = scalar_lea.vmem %s694_s6, 16  ;;  %s1002_s8 = scalar_lea.vmem %s694_s6, 32 }
 0x2e0   :  { %p999_p2 = scmp.ne.s32.totalorder %s694_s6, %s998_s7  ;;  %p1003_p3 = scmp.lt.s32.totalorder %s694_s6, %s694_s6 }
 0x2e1   :  { %p1004_p4 = scmp.lt.s32.totalorder %s1002_s8, %s998_s7 }
 0x2e3   :  { %p1005_p5 = por %p1004_p4, %p1003_p3 }
 0x2e5   :  { %p1006_p6 = pnand %p1005_p5, %p999_p2 }
 0x3af   :  { %v516_v10 = vpop.f32.mrb[4].mxu1 }
 0x3b0   :  { %v517_v11 = vadd.f32 %v734_v9, %v516_v10  ;;  %v878_v12 = vpop.f32.mrb[5].mxu1 }
 0x3b1   :  { %v519_v13 = vpop.f32.mrb[6].mxu1 }
 0x3b2   :  { %v520_v14 = vadd.f32 %v734_v9, %v519_v13  ;;  %v879_v15 = vpop.f32.mrb[7].mxu1  ;;  %v523_v16 = vmax.f32 %v517_v11, 0.0 }
 0x3b4   :  { %v524_v17 = vmax.f32 %v520_v14, 0.0 }
 0x3b6   :  { %v525_v18 = vpack.c.bf16 %v524_v17, %v523_v16 }
 0x3b8   :  { %897 = vmatmul.mubr.bf16.vlgmr.msra.gmra.mrb[8].mxu0 %v525_v18 }
 0x48b   :  { %v633_v19 = vpop.f32.mrb[8].mxu0 }
 0x48c   :  { %v634_v20 = vadd.f32 %v744_v0, %v633_v19  ;;  %v898_v21 = vpop.f32.mrb[9].mxu0 }
 0x48d   :  { %v636_v22 = vpop.f32.mrb[10].mxu0 }
 0x48e   :  { %v637_v23 = vadd.f32 %v744_v0, %v636_v22  ;;  %v899_v24 = vpop.f32.mrb[11].mxu0  ;;  %v640_v25 = vmax.f32 %v634_v20, 0.0 }
 0x490   :  { %v641_v26 = vmax.f32 %v637_v23, 0.0 }
 0x492   :  { %v642_v27 = vpack.c.bf16 %v641_v26, %v640_v25 }
 0x494   :  { %901 = vmatpush3.bf16.xpose.msra.mxu1 %v642_v27 }
 0x49b   :  { %903 = vmatmul.mubr.bf16.vlgmr.msra.gmra.mrb[8].mxu1 %v643_v28 }
 0x56e   :  { %v679_v30 = vpop.f32.mrb[8].mxu1 }
 0x56f   :  { %v680_v31 = vadd.f32 %v679_v30, %v644_v29  ;;  %v904_v32 = vpop.f32.mrb[9].mxu1 }
 0x570   :  { %v682_v33 = vpop.f32.mrb[10].mxu1 }
 0x571   :  { %v905_v34 = vpop.f32.mrb[11].mxu1  ;;  %686 = vst.msk [vmem:[#allocation8] sm:$0x1] %vm685_vm1, %v680_v31 }
 0x572   :  { %1009 = shalt.err (!%p1006_p6)
}
 0x573   :  { %s1010_s9 = scalar_lea.hbm %s1178_s5, 16 }
 0x574   :  { %p1011_p7 = scmp.ne.s32.totalorder %s1178_s5, %s1010_s9  ;;  %p1014_p8 = scmp.lt.u32.totalorder %s1010_s9, %s1178_s5 }
 0x576   :  { %p1016_p9 = pnand %p1014_p8, %p1011_p7 }
 0x578   :  { %1019 = shalt.err (!%p1016_p9)
}
 0x579   :  { %696 = dma.vmem_to_hbm [thread:$0]  %s694_s6, 16, %s1178_s5, [#allocation5]  }
 0x57a   :  { %1024 = dma.done.wait [#allocation5], 16  }
 0x57b   :  { %1025 = vsyncadd [#allocation5], 4294967280 }
 0x57c   :  { %700 = vsyncpa [#allocation4], 1 }
 0x57d   :  { %701 = vsyncpa [#allocation7], 1 }
 0x57e   :  { %702 = vsyncpa [#allocation5], 1 }

</bundles_post_ra>
